<compile_context>
chip_gen: v6e
topology: v6e:2x2x1
jax: 0.10.0
libtpu: 0.0.40
codegen_flags: <defaults>
</compile_context>

<pallas_src>
import functools

import jax
import jax.numpy as jnp
from jax import lax
from jax.experimental import pallas as pl
from jax.experimental.pallas import tpu as pltpu


def _round_up(x, m):
    return (x + m - 1) // m * m


def _actor_critic_kernel(x_ref, w1_ref, b1_ref, wh_ref, bh_ref, out_ref, *,
                         action_s, out_lanes, compute_dtype):
    # Layer 1 (+ ReLU): bf16 operands on the MXU, f32 accumulate & elementwise.
    x = x_ref[...].astype(compute_dtype)              # f32 -> bf16, hidden under DMA
    h = jnp.dot(x, w1_ref[...], preferred_element_type=jnp.float32)
    h = jnp.maximum(h + b1_ref[...], 0.0)              # (TB, 32) f32

    # Fused actor+critic heads: one MXU pass into a 128-lane-padded slab.
    # Columns [0:A) = actor logits, column A = critic value, rest = zeros.
    fused = jnp.dot(h.astype(compute_dtype), wh_ref[...],
                    preferred_element_type=jnp.float32) + bh_ref[...]  # (TB, 128)

    # Narrow working window: everything we need lives in the first out_lanes lanes.
    narrow = fused[:, :out_lanes]                       # (TB, 8) f32
    lane = lax.broadcasted_iota(jnp.int32, narrow.shape, dimension=1)

    # Masked softmax over the first `action_s` lanes. Stays f32 (the -1e30
    # sentinel must not be cast to bf16). Exact divide so sum(probs) == 1.
    logits = jnp.where(lane < action_s, narrow, jnp.float32(-1e30))
    m = jnp.max(logits, axis=-1, keepdims=True)
    e = jnp.exp(logits - m)
    probs = e / jnp.sum(e, axis=-1, keepdims=True)

    # Lane-dense narrow output: probs in [0:A), value in lane A, zeros elsewhere
    # (masked padded lanes have probs == 0).
    out_ref[...] = jnp.where(lane == action_s, narrow, probs)


def pack_params(params, compute_dtype=jnp.bfloat16):
    """One-time packing of the two heads into a lane-padded slab + bf16 casts.

    Call once after init and after each optimizer step -- NOT per forward call.
    Returns (packed_dict, action_s).
    """
    hidden, action_s = params["wa"].shape
    pad_lanes = max(128, _round_up(action_s + 1, 128))

    w_heads = jnp.zeros((hidden, pad_lanes), jnp.float32)
    w_heads = w_heads.at[:, :action_s].set(params["wa"])
    w_heads = w_heads.at[:, action_s].set(params["wc"][:, 0])
    b_heads = jnp.zeros((1, pad_lanes), jnp.float32)
    b_heads = b_heads.at[:, :action_s].set(params["ba"])
    b_heads = b_heads.at[:, action_s].set(params["bc"][:, 0])

    packed = {
        "w1": params["w1"].astype(compute_dtype),       # bf16 MXU operand
        "b1": params["b1"],                             # f32 (VPU work stays f32)
        "w_heads": w_heads.astype(compute_dtype),       # bf16 MXU operand
        "b_heads": b_heads,                             # f32
    }
    return packed, action_s


def actor_critic_forward(x, packed, action_s, *, block_batch=4096,
                         compute_dtype=jnp.bfloat16):
    """x: (batch, state_s) float32. packed: output of pack_params.

    Returns (probs (batch, action_s) f32, value (batch, 1) f32).
    """
    batch, state_s = x.shape
    _, hidden = packed["w1"].shape
    pad_lanes = packed["w_heads"].shape[1]
    out_lanes = _round_up(action_s + 1, 8)              # 8 when action_s <= 7

    # Batch tiling: small batches -> one step (dispatch overhead dominates);
    # large batches -> >= 2 steps so v7x's two TCs both get work, capped at
    # block_batch rows per step (well inside the 32 MiB scoped VMEM default).
    rows = _round_up(batch, 8)
    if rows <= 1024:
        tb = rows
    else:
        tb = min(block_batch, _round_up(pl.cdiv(rows, 2), 8))
    b_pad = _round_up(batch, tb)

    # Pad only when needed (common rollout batches need no wrapper pass at all).
    x_p = x if b_pad == batch else jnp.pad(x, ((0, b_pad - batch), (0, 0)))

    kernel = functools.partial(_actor_critic_kernel, action_s=action_s,
                               out_lanes=out_lanes, compute_dtype=compute_dtype)

    slab = pl.pallas_call(
        kernel,
        out_shape=jax.ShapeDtypeStruct((b_pad, out_lanes), jnp.float32),
        grid_spec=pltpu.PrefetchScalarGridSpec(
            num_scalar_prefetch=0,
            grid=(b_pad // tb,),
            in_specs=[
                pl.BlockSpec((tb, state_s), lambda i: (i, 0)),        # x tile
                pl.BlockSpec((state_s, hidden), lambda i: (0, 0)),    # W1 (resident)
                pl.BlockSpec((1, hidden), lambda i: (0, 0)),          # b1 (resident)
                pl.BlockSpec((hidden, pad_lanes), lambda i: (0, 0)),  # fused heads W
                pl.BlockSpec((1, pad_lanes), lambda i: (0, 0)),       # fused heads b
            ],
            out_specs=pl.BlockSpec((tb, out_lanes), lambda i: (i, 0)),
        ),
        compiler_params=pltpu.CompilerParams(
            dimension_semantics=("parallel",)),          # 2x on v7x dual-TC
    )(x_p, packed["w1"], packed["b1"], packed["w_heads"], packed["b_heads"])

    probs = slab[:batch, :action_s]
    value = slab[:batch, action_s:action_s + 1]
    return probs, value


def init_params(key, state_s, action_s, hidden=32):
    """Deterministic PyTorch-style (uniform +-1/sqrt(fan_in)) init.
    Weights stored already transposed to (in_features, out_features)."""
    def linear(k, fan_in, fan_out):
        kw, kb = jax.random.split(k)
        bound = 1.0 / jnp.sqrt(fan_in)
        w = jax.random.uniform(kw, (fan_in, fan_out), jnp.float32, -bound, bound)
        b = jax.random.uniform(kb, (1, fan_out), jnp.float32, -bound, bound)
        return w, b

    k1, k2, k3 = jax.random.split(key, 3)
    w1, b1 = linear(k1, state_s, hidden)
    wa, ba = linear(k2, hidden, action_s)
    wc, bc = linear(k3, hidden, 1)
    return {"w1": w1, "b1": b1, "wa": wa, "ba": ba, "wc": wc, "bc": bc}


def reference_forward_f32(x, p):
    """Pure-f32 semantic reference (the PyTorch module's math)."""
    h = jnp.maximum(x @ p["w1"] + p["b1"], 0.0)
    value = h @ p["wc"] + p["bc"]
    logits = h @ p["wa"] + p["ba"]
    return jax.nn.softmax(logits, axis=-1), value


def reference_forward_bf16(x, p, compute_dtype=jnp.bfloat16):
    """Numerics-matched reference: bf16 matmul operands, f32 accumulation."""
    xc = x.astype(compute_dtype)
    h = jnp.dot(xc, p["w1"].astype(compute_dtype),
                preferred_element_type=jnp.float32) + p["b1"]
    h = jnp.maximum(h, 0.0)
    hc = h.astype(compute_dtype)
    value = jnp.dot(hc, p["wc"].astype(compute_dtype),
                    preferred_element_type=jnp.float32) + p["bc"]
    logits = jnp.dot(hc, p["wa"].astype(compute_dtype),
                     preferred_element_type=jnp.float32) + p["ba"]
    return jax.nn.softmax(logits, axis=-1), value


# TODO(synk): optimize() / Adam / Categorical sampling are host-side training
# utilities with no Pallas equivalent; only forward() is implemented here.

if __name__ == "__main__":
    key = jax.random.PRNGKey(0)
    kx, kp = jax.random.split(key)

    batch, state_s, action_s = 64, 16, 4
    x = jax.random.normal(kx, (batch, state_s), dtype=jnp.float32)
    params = init_params(kp, state_s, action_s)

    # Pack once (not per call).
    packed, action_s = pack_params(params)

    probs, value = actor_critic_forward(x, packed, action_s)
    probs = jax.block_until_ready(probs)
    value = jax.block_until_ready(value)

    assert probs.shape == (batch, action_s) and value.shape == (batch, 1)
    assert probs.dtype == jnp.float32 and value.dtype == jnp.float32

    # Semantic check vs. pure-f32 reference (loose: bf16 matmul operands).
    ref_probs, ref_value = reference_forward_f32(x, params)
    assert jnp.allclose(probs, ref_probs, atol=3e-2, rtol=3e-2)
    assert jnp.allclose(value, ref_value, atol=3e-2, rtol=3e-2)

    # Numerics-matched check vs. bf16-operand reference (tight).
    mref_probs, mref_value = reference_forward_bf16(x, params)
    assert jnp.allclose(probs, mref_probs, atol=2e-3, rtol=2e-3)
    assert jnp.allclose(value, mref_value, atol=2e-3, rtol=2e-3)

    # Softmax normalization (exact divide -> f32 rounding error only).
    assert jnp.allclose(jnp.sum(probs, axis=-1), 1.0, atol=1e-4)

    print("KERNEL_OK")
</pallas_src>

<mosaic_0001>
module attributes {stable_mosaic.version = 11 : i64} {
  func.func @_actor_critic_kernel(%arg0: i32, %arg1: memref<64x16xf32, #tpu.memory_space<vmem>>, %arg2: memref<16x32xbf16, #tpu.memory_space<vmem>>, %arg3: memref<1x32xf32, #tpu.memory_space<vmem>>, %arg4: memref<32x128xbf16, #tpu.memory_space<vmem>>, %arg5: memref<1x128xf32, #tpu.memory_space<vmem>>, %arg6: memref<64x8xf32, #tpu.memory_space<vmem>>) attributes {dimension_semantics = [#tpu.dimension_semantics<parallel>], iteration_bounds = array<i64: 1>, scalar_prefetch = 0 : i64, scratch_operands = 0 : i64, tpu.core_type = #tpu.core_type<tc>, window_params = [{transform_indices = @transform_0, window_bounds = array<i64: 64, 16>}, {pipeline_mode = #tpu.pipeline_mode<synchronous>, transform_indices = @transform_1, window_bounds = array<i64: 16, 32>}, {pipeline_mode = #tpu.pipeline_mode<synchronous>, transform_indices = @transform_2, window_bounds = array<i64: 1, 32>}, {pipeline_mode = #tpu.pipeline_mode<synchronous>, transform_indices = @transform_3, window_bounds = array<i64: 32, 128>}, {pipeline_mode = #tpu.pipeline_mode<synchronous>, transform_indices = @transform_4, window_bounds = array<i64: 1, 128>}, {transform_indices = @transform_5, window_bounds = array<i64: 64, 8>}]} {
    %c0 = arith.constant 0 : index
    %c0_0 = arith.constant 0 : index
    %0 = vector.load %arg1[%c0, %c0_0] : memref<64x16xf32, #tpu.memory_space<vmem>>, vector<64x16xf32>
    %1 = arith.truncf %0 : vector<64x16xf32> to vector<64x16xbf16>
    %c0_1 = arith.constant 0 : index
    %c0_2 = arith.constant 0 : index
    %2 = vector.load %arg2[%c0_1, %c0_2] : memref<16x32xbf16, #tpu.memory_space<vmem>>, vector<16x32xbf16>
    %cst = arith.constant dense<0.000000e+00> : vector<64x32xf32>
    %3 = tpu.matmul %1, %2, %cst {dimension_numbers = #tpu.dot_dimension_numbers<[1], [0], [0], [1], [0, 0, 1, 1], [], []>} : vector<64x16xbf16>, vector<16x32xbf16>, vector<64x32xf32> -> vector<64x32xf32>
    %c0_3 = arith.constant 0 : index
    %c0_4 = arith.constant 0 : index
    %4 = vector.load %arg3[%c0_3, %c0_4] : memref<1x32xf32, #tpu.memory_space<vmem>>, vector<1x32xf32>
    %5 = vector.broadcast %4 : vector<1x32xf32> to vector<64x32xf32>
    %6 = arith.addf %3, %5 : vector<64x32xf32>
    %cst_5 = arith.constant 0.000000e+00 : f32
    %7 = vector.broadcast %cst_5 : f32 to vector<64x32xf32>
    %8 = arith.maximumf %6, %7 : vector<64x32xf32>
    %9 = arith.truncf %8 : vector<64x32xf32> to vector<64x32xbf16>
    %c0_6 = arith.constant 0 : index
    %c0_7 = arith.constant 0 : index
    %10 = vector.load %arg4[%c0_6, %c0_7] : memref<32x128xbf16, #tpu.memory_space<vmem>>, vector<32x128xbf16>
    %cst_8 = arith.constant dense<0.000000e+00> : vector<64x128xf32>
    %11 = tpu.matmul %9, %10, %cst_8 {dimension_numbers = #tpu.dot_dimension_numbers<[1], [0], [0], [1], [0, 0, 1, 1], [], []>} : vector<64x32xbf16>, vector<32x128xbf16>, vector<64x128xf32> -> vector<64x128xf32>
    %c0_9 = arith.constant 0 : index
    %c0_10 = arith.constant 0 : index
    %12 = vector.load %arg5[%c0_9, %c0_10] : memref<1x128xf32, #tpu.memory_space<vmem>>, vector<1x128xf32>
    %13 = vector.broadcast %12 : vector<1x128xf32> to vector<64x128xf32>
    %14 = arith.addf %11, %13 : vector<64x128xf32>
    %15 = vector.extract_strided_slice %14 {offsets = [0, 0], sizes = [64, 8], strides = [1, 1]} : vector<64x128xf32> to vector<64x8xf32>
    %16 = tpu.iota {dimensions = array<i32: 1>} : vector<64x8xi32>
    %c4_i32 = arith.constant 4 : i32
    %17 = vector.broadcast %c4_i32 : i32 to vector<64x8xi32>
    %18 = arith.cmpi slt, %16, %17 : vector<64x8xi32>
    %cst_11 = arith.constant -1.000000e+30 : f32
    %19 = vector.broadcast %cst_11 : f32 to vector<64x8xf32>
    %20 = arith.select %18, %15, %19 : vector<64x8xi1>, vector<64x8xf32>
    %cst_12 = arith.constant dense<0xFF800000> : vector<64xf32>
    %21 = vector.multi_reduction <maximumf>, %20, %cst_12 [1] : vector<64x8xf32> to vector<64xf32>
    %22 = vector.shape_cast %21 : vector<64xf32> to vector<64x1xf32>
    %23 = vector.broadcast %22 : vector<64x1xf32> to vector<64x8xf32>
    %24 = arith.subf %20, %23 : vector<64x8xf32>
    %25 = math.exp %24 : vector<64x8xf32>
    %cst_13 = arith.constant dense<0.000000e+00> : vector<64xf32>
    %26 = vector.multi_reduction <add>, %25, %cst_13 [1] : vector<64x8xf32> to vector<64xf32>
    %27 = vector.shape_cast %26 : vector<64xf32> to vector<64x1xf32>
    %28 = vector.broadcast %27 : vector<64x1xf32> to vector<64x8xf32>
    %29 = arith.divf %25, %28 : vector<64x8xf32>
    %c4_i32_14 = arith.constant 4 : i32
    %30 = vector.broadcast %c4_i32_14 : i32 to vector<64x8xi32>
    %31 = arith.cmpi eq, %16, %30 : vector<64x8xi32>
    %32 = arith.select %31, %15, %29 : vector<64x8xi1>, vector<64x8xf32>
    %c0_15 = arith.constant 0 : index
    %c0_16 = arith.constant 0 : index
    %33 = vector.load %arg6[%c0_15, %c0_16] : memref<64x8xf32, #tpu.memory_space<vmem>>, vector<64x8xf32>
    tpu.vector_store %arg6[%c0_15, %c0_16], %32 {strides = array<i32>} : memref<64x8xf32, #tpu.memory_space<vmem>>, vector<64x8xf32>,
    return
  }
  func.func @transform_0(%arg0: i32) -> (i32, i32) {
    %c0_i32 = arith.constant 0 : i32
    %c0_i32_0 = arith.constant 0 : i32
    return %arg0, %c0_i32 : i32, i32
  }
  func.func @transform_1(%arg0: i32) -> (i32, i32) {
    %c0_i32 = arith.constant 0 : i32
    %c0_i32_0 = arith.constant 0 : i32
    %c0_i32_1 = arith.constant 0 : i32
    return %c0_i32, %c0_i32_0 : i32, i32
  }
  func.func @transform_2(%arg0: i32) -> (i32, i32) {
    %c0_i32 = arith.constant 0 : i32
    %c0_i32_0 = arith.constant 0 : i32
    %c0_i32_1 = arith.constant 0 : i32
    return %c0_i32, %c0_i32_0 : i32, i32
  }
  func.func @transform_3(%arg0: i32) -> (i32, i32) {
    %c0_i32 = arith.constant 0 : i32
    %c0_i32_0 = arith.constant 0 : i32
    %c0_i32_1 = arith.constant 0 : i32
    return %c0_i32, %c0_i32_0 : i32, i32
  }
  func.func @transform_4(%arg0: i32) -> (i32, i32) {
    %c0_i32 = arith.constant 0 : i32
    %c0_i32_0 = arith.constant 0 : i32
    %c0_i32_1 = arith.constant 0 : i32
    return %c0_i32, %c0_i32_0 : i32, i32
  }
  func.func @transform_5(%arg0: i32) -> (i32, i32) {
    %c0_i32 = arith.constant 0 : i32
    %c0_i32_0 = arith.constant 0 : i32
    return %arg0, %c0_i32 : i32, i32
  }
}

</mosaic_0001>

<bundles_post_ra>
// kernel: tpu_custom_call.1
= control target key start
LH: loop header
LB: loop body
LE: loop exit
PB: predicated region body
PF: predicated region fallthrough
CT: control target
= control target key end

     0   :  { %vm48_vm0 = vcmask 130048   ;;  %vm161_vm1 = vcmask 261120   ;;  %v239_v44 = vlaneseq  ;;  %vm250_vm3 = vcmask 64512   ;;  %s634_s1 = inlined_call_operand.vmem [shape: bf16[16,32], index: 1, kind: input, shape index: {}]   ;;  %s635_s0 = inlined_call_operand.vmem [shape: f32[64,16], index: 0, kind: input, shape index: {}]   ;;  %s636_s3 = inlined_call_operand.vmem [shape: bf16[32,128], index: 3, kind: input, shape index: {}]   ;;  %s637_s2 = inlined_call_operand.vmem [shape: f32[1,32], index: 2, kind: input, shape index: {}]   ;;  %s638_s4 = inlined_call_operand.vmem [shape: f32[1,128], index: 4, kind: input, shape index: {}]   ;;  %s639_s5 = inlined_call_operand.vmem [shape: f32[64,8], index: 5, kind: output, shape index: {}]  }
   0x1   :  { %v406_v0 = vld [vmem:[%s634_s1] sm:$0xff]   ;;  %v22_v2 = vld [vmem:[%s635_s0 + $0x8] sm:$0xff]  ;;  %v23_v3 = vld [vmem:[%s635_s0 + $0x10] sm:$0xff] }
   0x2   :  { %v21_v1 = vld [vmem:[%s635_s0] sm:$0xff]  ;;  %384 = vmatprep.subr.bf16.mxu0 %v406_v0  ;;  %v24_v5 = vld [vmem:[%s635_s0 + $0x18] sm:$0xff]  ;;  %v26_v7 = vld [vmem:[%s635_s0 + $0x28] sm:$0xff]  ;;  %v515_v45 = vand.u32 127, %v239_v44 }
   0x3   :  { %v29_v4 = vpack.c.bf16 %v22_v2, %v21_v1  ;;  %v25_v6 = vld [vmem:[%s635_s0 + $0x20] sm:$0xff]  ;;  %385 = vmatpush3.bf16.msra.mxu0 %v406_v0  ;;  %v30_v8 = vpack.c.bf16 %v24_v5, %v23_v3  ;;  %v27_v10 = vld [vmem:[%s635_s0 + $0x30] sm:$0xff]  ;;  %v28_v11 = vld [vmem:[%s635_s0 + $0x38] sm:$0xff] }
   0x4   :  { %v31_v9 = vpack.c.bf16 %v26_v7, %v25_v6  ;;  %v32_v12 = vpack.c.bf16 %v28_v11, %v27_v10  ;;  %v407_v13 = vld [vmem:[%s636_s3 + $0x8] sm:$0xff]   ;;  %v408_v14 = vld [vmem:[%s636_s3] sm:$0xff]   ;;  %vm241_vm2 = vcmp.lt.s32.totalorder %v515_v45, 4  ;;  %vm339_vm4 = vcmp.eq.s32.totalorder %v515_v45, 4 }
   0x5   :  { %386 = vmatprep.mubr.msk.bf16.mxu0 %vm48_vm0, %v29_v4  ;;  %394 = vmatprep.subr.bf16.mxu1 %v407_v13  ;;  %v360_v17 = vld [vmem:[%s637_s2] ss:$0 sm:$0xff] }
   0x6   :  { %387 = vmatmul.mubr.msk.bf16.vlgmr.msra.gmra.mxu0 %vm48_vm0, %v30_v8  ;;  %395 = vmatpush3.bf16.msra.mxu1 %v407_v13  ;;  %v366_v46 = vld [vmem:[%s638_s4] ss:$0 sm:$0xff] }
   0x7   :  { %390 = vmatprep.mubr.msk.bf16.mxu0 %vm48_vm0, %v31_v9  ;;  %396 = vmatprep.subr.bf16.mxu1 %v408_v14 }
   0xa   :  { %397 = vmatpush3.bf16.msra.mxu1 %v408_v14 }
   0xe   :  { %391 = vmatmul.mubr.msk.bf16.gmra.mxu0 %vm48_vm0, %v32_v12 }
  0xc6   :  { %v388_v15 = vpop.f32.mrf.mxu0 }
  0xc7   :  { %v104_v21 = vadd.f32 %v388_v15, %v360_v17 }
  0xc8   :  { %v95_v16 = vpop.f32.mrf.mxu0 }
  0xc9   :  { %v96_v19 = vadd.f32 %v360_v17, %v95_v16  ;;  %v128_v28 = vmax.f32 %v104_v21, 0.0 }
  0xca   :  { %v389_v18 = vpop.f32.mrf.mxu0 }
  0xcb   :  { %v107_v20 = vadd.f32 %v389_v18, %v360_v17  ;;  %v126_v26 = vmax.f32 %v96_v19, 0.0 }
  0xcc   :  { %v98_v22 = vpop.f32.mrf.mxu0 }
  0xcd   :  { %v99_v23 = vadd.f32 %v360_v17, %v98_v22  ;;  %v129_v24 = vmax.f32 %v107_v20, 0.0 }
  0xce   :  { %v392_v25 = vpop.f32.mrf.mxu0 }
  0xcf   :  { %v127_v27 = vmax.f32 %v99_v23, 0.0  ;;  %v135_v31 = vpack.c.bf16 %v129_v24, %v128_v28  ;;  %v120_v35 = vadd.f32 %v392_v25, %v360_v17 }
  0xd0   :  { %v111_v29 = vpop.f32.mrf.mxu0 }
  0xd1   :  { %v134_v30 = vpack.c.bf16 %v127_v27, %v126_v26  ;;  %v112_v33 = vadd.f32 %v360_v17, %v111_v29  ;;  %v132_v41 = vmax.f32 %v120_v35, 0.0 }
  0xd2   :  { %v393_v32 = vpop.f32.mrf.mxu0 }
  0xd3   :  { %v123_v34 = vadd.f32 %v393_v32, %v360_v17  ;;  %398 = vmatprep.mubr.msk.bf16.mxu1 %vm161_vm1, %v134_v30  ;;  %v130_v39 = vmax.f32 %v112_v33, 0.0 }
  0xd4   :  { %v114_v36 = vpop.f32.mrf.mxu0  ;;  %399 = vmatmul.mubr.msk.bf16.vlgmr.msra.gmra.mxu1 %vm161_vm1, %v135_v31 }
  0xd5   :  { %v115_v37 = vadd.f32 %v360_v17, %v114_v36  ;;  %v133_v38 = vmax.f32 %v123_v34, 0.0 }
  0xd7   :  { %v131_v40 = vmax.f32 %v115_v37, 0.0  ;;  %v137_v43 = vpack.c.bf16 %v133_v38, %v132_v41 }
  0xd9   :  { %v136_v42 = vpack.c.bf16 %v131_v40, %v130_v39 }
  0xdb   :  { %402 = vmatprep.mubr.msk.bf16.mxu1 %vm161_vm1, %v136_v42 }
  0xdc   :  { %403 = vmatmul.mubr.msk.bf16.gmra.mxu1 %vm161_vm1, %v137_v43 }
 0x194   :  { %v400_v47 = vpop.f32.mrf.mxu1 }
 0x195   :  { %v521_v48 = vadd.f32 %v400_v47, %v366_v46 }
 0x196   :  { %v208_v49 = vpop.f32.mrf.mxu1 }
 0x197   :  { %v523_v50 = vadd.f32 %v366_v46, %v208_v49  ;;  %v244_v51 = vsel %vm241_vm2, %v521_v48, -1e+30 }
 0x198   :  { %v401_v52 = vpop.f32.mrf.mxu1  ;;  %v257_v53 = vsel %vm250_vm3, %v244_v51, -inf }
 0x199   :  { %v529_v54 = vadd.f32 %v401_v52, %v366_v46  ;;  %258 = vmax.xlane.f32.xlu1 %v257_v53  ;;  %v242_v55 = vsel %vm241_vm2, %v523_v50, -1e+30 }
 0x19a   :  { %v211_v56 = vpop.f32.mrf.mxu1  ;;  %v251_v57 = vsel %vm250_vm3, %v242_v55, -inf }
 0x19b   :  { %v535_v58 = vadd.f32 %v366_v46, %v211_v56  ;;  %252 = vmax.xlane.f32.xlu0 %v251_v57  ;;  %v245_v59 = vsel %vm241_vm2, %v529_v54, -1e+30 }
 0x19c   :  { %v404_v60 = vpop.f32.mrf.mxu1  ;;  %v260_v61 = vsel %vm250_vm3, %v245_v59, -inf }
 0x19d   :  { %261 = vmax.xlane.f32.xlu1 %v260_v61  ;;  %v243_v62 = vsel %vm241_vm2, %v535_v58, -1e+30  ;;  %v545_v1 = vadd.f32 %v404_v60, %v366_v46 }
 0x19e   :  { %v224_v63 = vpop.f32.mrf.mxu1  ;;  %v254_v0 = vsel %vm250_vm3, %v243_v62, -inf }
 0x19f   :  { %v547_v2 = vadd.f32 %v366_v46, %v224_v63  ;;  %255 = vmax.xlane.f32.xlu0 %v254_v0  ;;  %v248_v9 = vsel %vm241_vm2, %v545_v1, -1e+30 }
 0x1a0   :  { %v405_v3 = vpop.f32.mrf.mxu1  ;;  %v269_v12 = vsel %vm250_vm3, %v248_v9, -inf }
 0x1a1   :  { %v246_v4 = vsel %vm241_vm2, %v547_v2, -1e+30  ;;  %v553_v7 = vadd.f32 %v405_v3, %v366_v46 }
 0x1a2   :  { %v227_v5 = vpop.f32.mrf.mxu1  ;;  %v263_v6 = vsel %vm250_vm3, %v246_v4, -inf }
 0x1a3   :  { %v555_v8 = vadd.f32 %v366_v46, %v227_v5  ;;  %264 = vmax.xlane.f32.xlu0 %v263_v6  ;;  %v249_v13 = vsel %vm241_vm2, %v553_v7, -1e+30 }
 0x1a4   :  { %v272_v14 = vsel %vm250_vm3, %v249_v13, -inf }
 0x1a5   :  { %v247_v10 = vsel %vm241_vm2, %v555_v8, -1e+30 }
 0x1a6   :  { %v266_v11 = vsel %vm250_vm3, %v247_v10, -inf }
 0x1a7   :  { %267 = vmax.xlane.f32.xlu1 %v266_v11  ;;  %270 = vmax.xlane.f32.xlu0 %v269_v12 }
 0x1ab   :  { %273 = vmax.xlane.f32.xlu1 %v272_v14 }
 0x222   :  { %v259_v15 = vpop.xlane.xlu1 %258 }
 0x223   :  { %v277_v16 = vsub.f32 %v244_v51, %v259_v15 }
 0x224   :  { %v253_v17 = vpop.xlane.xlu0 %252 }
 0x225   :  { %v287_v18 = vmul.f32 1.442695, %v277_v16  ;;  %v275_v19 = vsub.f32 %v242_v55, %v253_v17 }
 0x226   :  { %v262_v20 = vpop.xlane.xlu1 %261 }
 0x227   :  { %409 = vpow2.f32 %v287_v18  ;;  %v283_v21 = vmul.f32 1.442695, %v275_v19  ;;  %v278_v22 = vsub.f32 %v245_v59, %v262_v20 }
 0x228   :  { %v256_v23 = vpop.xlane.xlu0 %255 }
 0x229   :  { %411 = vpow2.f32 %v283_v21  ;;  %v289_v24 = vmul.f32 1.442695, %v278_v22  ;;  %v276_v25 = vsub.f32 %v243_v62, %v256_v23 }
 0x22b   :  { %413 = vpow2.f32 %v289_v24  ;;  %v285_v26 = vmul.f32 1.442695, %v276_v25 }
 0x22c   :  { %v265_v27 = vpop.xlane.xlu0 %264 }
 0x22d   :  { %415 = vpow2.f32 %v285_v26  ;;  %v279_v28 = vsub.f32 %v246_v4, %v265_v27 }
 0x22f   :  { %v291_v29 = vmul.f32 1.442695, %v279_v28 }
 0x230   :  { %v268_v30 = vpop.xlane.xlu1 %267  ;;  %v271_v31 = vpop.xlane.xlu0 %270 }
 0x231   :  { %417 = vpow2.f32 %v291_v29  ;;  %v280_v32 = vsub.f32 %v247_v10, %v268_v30  ;;  %v281_v33 = vsub.f32 %v248_v9, %v271_v31 }
 0x233   :  { %v293_v34 = vmul.f32 1.442695, %v280_v32  ;;  %v295_v35 = vmul.f32 1.442695, %v281_v33 }
 0x234   :  { %v410_v36 = vpop.eup %409  ;;  %v274_v37 = vpop.xlane.xlu1 %273 }
 0x235   :  { %419 = vpow2.f32 %v293_v34  ;;  %v282_v38 = vsub.f32 %v249_v13, %v274_v37  ;;  %v305_v39 = vsel %vm250_vm3, %v410_v36, 0.0 }
 0x236   :  { %v412_v40 = vpop.eup %411  ;;  %421 = vpow2.f32 %v295_v35  ;;  %306 = vadd.xlane.f32.xlu0 %v305_v39 }
 0x237   :  { %v297_v41 = vmul.f32 1.442695, %v282_v38  ;;  %v299_v44 = vsel %vm250_vm3, %v412_v40, 0.0 }
 0x238   :  { %v414_v42 = vpop.eup %413 }
 0x239   :  { %423 = vpow2.f32 %v297_v41  ;;  %v308_v43 = vsel %vm250_vm3, %v414_v42, 0.0 }
 0x23a   :  { %v416_v46 = vpop.eup %415  ;;  %309 = vadd.xlane.f32.xlu1 %v308_v43  ;;  %300 = vadd.xlane.f32.xlu0 %v299_v44 }
 0x23b   :  { %v302_v47 = vsel %vm250_vm3, %v416_v46, 0.0 }
 0x23e   :  { %v418_v49 = vpop.eup %417  ;;  %303 = vadd.xlane.f32.xlu1 %v302_v47 }
 0x23f   :  { %v311_v51 = vsel %vm250_vm3, %v418_v49, 0.0 }
 0x240   :  { %312 = vadd.xlane.f32.xlu0 %v311_v51 }
 0x242   :  { %v420_v52 = vpop.eup %419 }
 0x243   :  { %v422_v53 = vpop.eup %421  ;;  %v314_v55 = vsel %vm250_vm3, %v420_v52, 0.0 }
 0x244   :  { %315 = vadd.xlane.f32.xlu1 %v314_v55  ;;  %v317_v56 = vsel %vm250_vm3, %v422_v53, 0.0 }
 0x245   :  { %318 = vadd.xlane.f32.xlu0 %v317_v56 }
 0x246   :  { %v424_v57 = vpop.eup %423 }
 0x247   :  { %v320_v59 = vsel %vm250_vm3, %v424_v57, 0.0 }
 0x248   :  { %321 = vadd.xlane.f32.xlu1 %v320_v59 }
 0x2bf   :  { %v307_v60 = vpop.xlane.xlu0 %306 }
 0x2c0   :  { %425 = vrcp.f32 %v307_v60 }
 0x2c3   :  { %v310_v61 = vpop.xlane.xlu1 %309  ;;  %v301_v62 = vpop.xlane.xlu0 %300 }
 0x2c4   :  { %427 = vrcp.f32 %v310_v61 }
 0x2c5   :  { %429 = vrcp.f32 %v301_v62 }
 0x2c7   :  { %v304_v63 = vpop.xlane.xlu1 %303 }
 0x2c8   :  { %431 = vrcp.f32 %v304_v63 }
 0x2c9   :  { %v313_v0 = vpop.xlane.xlu0 %312 }
 0x2ca   :  { %433 = vrcp.f32 %v313_v0 }
 0x2cd   :  { %v426_v3 = vpop.eup %425  ;;  %v316_v4 = vpop.xlane.xlu1 %315 }
 0x2ce   :  { %v328_v5 = vmul.f32 %v426_v3, %v410_v36  ;;  %435 = vrcp.f32 %v316_v4  ;;  %v319_v6 = vpop.xlane.xlu0 %318 }
 0x2cf   :  { %437 = vrcp.f32 %v319_v6 }
 0x2d0   :  { %v342_v9 = vsel %vm339_vm4, %v521_v48, %v328_v5 }
 0x2d1   :  { %v428_v10 = vpop.eup %427  ;;  %350 = vst.msk [vmem:[%s639_s5 + $0x10] sm:$0xff] %vm250_vm3, %v342_v9  ;;  %v322_v11 = vpop.xlane.xlu1 %321 }
 0x2d2   :  { %v430_v12 = vpop.eup %429  ;;  %v330_v13 = vmul.f32 %v428_v10, %v414_v42  ;;  %439 = vrcp.f32 %v322_v11 }
 0x2d3   :  { %v324_v14 = vmul.f32 %v430_v12, %v412_v40 }
 0x2d4   :  { %v343_v15 = vsel %vm339_vm4, %v529_v54, %v330_v13 }
 0x2d5   :  { %v432_v16 = vpop.eup %431  ;;  %351 = vst.msk [vmem:[%s639_s5 + $0x18] sm:$0xff] %vm250_vm3, %v343_v15  ;;  %v340_v48 = vsel %vm339_vm4, %v523_v50, %v324_v14 }
 0x2d6   :  { %348 = vst.msk [vmem:[%s639_s5] sm:$0xff] %vm250_vm3, %v340_v48  ;;  %v326_v17 = vmul.f32 %v432_v16, %v416_v46 }
 0x2d7   :  { %v434_v18 = vpop.eup %433 }
 0x2d8   :  { %v341_v54 = vsel %vm339_vm4, %v535_v58, %v326_v17  ;;  %v332_v19 = vmul.f32 %v434_v18, %v418_v49 }
 0x2d9   :  { %349 = vst.msk [vmem:[%s639_s5 + $0x8] sm:$0xff] %vm250_vm3, %v341_v54 }
 0x2da   :  { %v344_v50 = vsel %vm339_vm4, %v547_v2, %v332_v19 }
 0x2db   :  { %v436_v20 = vpop.eup %435  ;;  %352 = vst.msk [vmem:[%s639_s5 + $0x20] sm:$0xff] %vm250_vm3, %v344_v50 }
 0x2dc   :  { %v438_v21 = vpop.eup %437  ;;  %v334_v22 = vmul.f32 %v436_v20, %v420_v52 }
 0x2dd   :  { %v336_v23 = vmul.f32 %v438_v21, %v422_v53 }
 0x2de   :  { %v345_v58 = vsel %vm339_vm4, %v555_v8, %v334_v22 }
 0x2df   :  { %v440_v24 = vpop.eup %439  ;;  %353 = vst.msk [vmem:[%s639_s5 + $0x28] sm:$0xff] %vm250_vm3, %v345_v58  ;;  %v346_v2 = vsel %vm339_vm4, %v545_v1, %v336_v23 }
 0x2e0   :  { %354 = vst.msk [vmem:[%s639_s5 + $0x30] sm:$0xff] %vm250_vm3, %v346_v2  ;;  %v338_v25 = vmul.f32 %v440_v24, %v424_v57 }
 0x2e2   :  { %v347_v8 = vsel %vm339_vm4, %v553_v7, %v338_v25 }
 0x2e3   :  { %355 = vst.msk [vmem:[%s639_s5 + $0x38] sm:$0xff] %vm250_vm3, %v347_v8 }

</bundles_post_ra>
